<compile_context>
chip_gen: v6e
topology: v6e:2x2x1
jax: 0.10.0
libtpu: 0.0.40
codegen_flags: <defaults>
</compile_context>

<pallas_src>
import jax
import jax.numpy as jnp
from jax import lax
from jax.experimental import pallas as pl
from jax.experimental.pallas import tpu as pltpu


def nand_kernel(x_ref, ia_ref, ib_ref, o_ref):
    """x_ref: (tb, Xp) bf16, ia/ib_ref: (1, ty) int32, o_ref: (tb, ty) f32."""
    x = x_ref[...]                                   # (tb, Xp) bf16
    Xp = x.shape[1]
    ty = ia_ref.shape[1]

    # Rebuild the one-hot selector masks directly in (Xp, ty) orientation:
    # mask[i, j] = 1  iff  i == idx[j].  Pure VPU compare, no reductions,
    # no transposes; padded X rows (i >= real X) are never selected.
    row = lax.broadcasted_iota(jnp.int32, (Xp, ty), 0)
    ma = (row == ia_ref[...]).astype(jnp.bfloat16)   # (Xp, ty)
    mb = (row == ib_ref[...]).astype(jnp.bfloat16)   # (Xp, ty)

    # x @ mask contracts the last dim of x with the first dim of the mask:
    # MXU matmul with bf16 operands, f32 accumulation (exact for {0,1} data).
    out_a = jnp.dot(x, ma, preferred_element_type=jnp.float32)   # (tb, ty)
    out_b = jnp.dot(x, mb, preferred_element_type=jnp.float32)   # (tb, ty)

    # NAND on binary values.
    # TODO(synk): check_binary_tensor asserts are host-side; not done in-kernel.
    o_ref[...] = (1.0 - out_a * out_b).astype(o_ref.dtype)


def _round_up(v, m):
    return ((v + m - 1) // m) * m


def compacted_nand_forward(x, wa, wb, *, tb=None, ty=None):
    """Inference forward of Compacted_Nand. x: (B, X) f32 {0,1}; wa/wb: (Y, X)."""
    B, X = x.shape
    Y, Xw = wa.shape
    assert Xw == X and wb.shape == (Y, X)

    # Hoist the argmax off the kernel hot path (tiny XLA op on the weights).
    idx_a = jnp.argmax(wa, axis=1).astype(jnp.int32)          # (Y,)
    idx_b = jnp.argmax(wb, axis=1).astype(jnp.int32)          # (Y,)

    # Pad to lane/sublane-friendly sizes.  X is the contraction dim and is kept
    # untiled per block (add a K axis + f32 accumulator if X ever gets huge).
    Xp = _round_up(X, 128)
    Yp = _round_up(Y, 128)
    if tb is None:
        tb = min(_round_up(B, 8), 256)
    Bp = _round_up(B, tb)
    if ty is None:
        ty = min(Yp, 256)
    Yp = _round_up(Yp, ty)

    # bf16 x halves DMA/VMEM bytes and uses the native MXU path; exact for {0,1}.
    x_p = jnp.pad(x.astype(jnp.bfloat16), ((0, Bp - B), (0, Xp - X)))
    ia = jnp.pad(idx_a[None, :], ((0, 0), (0, Yp - Y)))       # (1, Yp) int32
    ib = jnp.pad(idx_b[None, :], ((0, 0), (0, Yp - Y)))       # (1, Yp) int32

    out = pl.pallas_call(
        nand_kernel,
        out_shape=jax.ShapeDtypeStruct((Bp, Yp), jnp.float32),
        grid_spec=pltpu.PrefetchScalarGridSpec(
            num_scalar_prefetch=0,
            grid=(Bp // tb, Yp // ty),
            in_specs=[
                pl.BlockSpec((tb, Xp), lambda bi, yi: (bi, 0)),
                pl.BlockSpec((1, ty), lambda bi, yi: (0, yi)),
                pl.BlockSpec((1, ty), lambda bi, yi: (0, yi)),
            ],
            out_specs=pl.BlockSpec((tb, ty), lambda bi, yi: (bi, yi)),
        ),
        compiler_params=pltpu.CompilerParams(
            dimension_semantics=("parallel", "parallel"),
            vmem_limit_bytes=32 * 1024 * 1024,
        ),
    )(x_p, ia, ib)

    return out[:B, :Y]


def xavier_uniform(key, y, x):
    # torch.nn.init.xavier_uniform_ on a (y, x) Linear weight:
    # bound = sqrt(6 / (fan_in + fan_out)) = sqrt(6 / (x + y))
    bound = (6.0 / (x + y)) ** 0.5
    return jax.random.uniform(key, (y, x), jnp.float32, -bound, bound)


if __name__ == "__main__":
    key = jax.random.PRNGKey(0)
    k_x, k_a, k_b = jax.random.split(key, 3)

    B, X, Y = 8, 32, 16          # batch, input features, output features
    # binary {0,1} inputs, as the module expects
    x = (jax.random.uniform(k_x, (B, X)) > 0.5).astype(jnp.float32)
    wa = xavier_uniform(k_a, Y, X)
    wb = xavier_uniform(k_b, Y, X)

    out = compacted_nand_forward(x, wa, wb)
    out = jax.block_until_ready(out)

    # Reference check in plain JAX (same semantics as the PyTorch forward).
    ma = jax.nn.one_hot(jnp.argmax(wa, axis=1), X, dtype=jnp.float32)   # (Y, X)
    mb = jax.nn.one_hot(jnp.argmax(wb, axis=1), X, dtype=jnp.float32)   # (Y, X)
    ref = 1.0 - (x @ ma.T) * (x @ mb.T)

    assert out.shape == (B, Y)
    assert jnp.all((out == 0) | (out == 1)), "nand output not binary"
    assert jnp.allclose(out, ref), "mismatch vs reference"

    # TODO(synk): train_mode policy-gradient path (multinomial sampling +
    # REINFORCE backward) is training-only glue and not part of this kernel.

    print("KERNEL_OK")
</pallas_src>

<mosaic_0001>
module attributes {stable_mosaic.version = 11 : i64} {
  func.func @nand_kernel(%arg0: i32, %arg1: i32, %arg2: memref<8x128xbf16, #tpu.memory_space<vmem>>, %arg3: memref<1x128xi32, #tpu.memory_space<vmem>>, %arg4: memref<1x128xi32, #tpu.memory_space<vmem>>, %arg5: memref<8x128xf32, #tpu.memory_space<vmem>>) attributes {dimension_semantics = [#tpu.dimension_semantics<parallel>, #tpu.dimension_semantics<parallel>], iteration_bounds = array<i64: 1, 1>, scalar_prefetch = 0 : i64, scratch_operands = 0 : i64, tpu.core_type = #tpu.core_type<tc>, window_params = [{transform_indices = @transform_0, window_bounds = array<i64: 8, 128>}, {transform_indices = @transform_1, window_bounds = array<i64: 1, 128>}, {transform_indices = @transform_2, window_bounds = array<i64: 1, 128>}, {transform_indices = @transform_3, window_bounds = array<i64: 8, 128>}]} {
    %c0 = arith.constant 0 : index
    %c0_0 = arith.constant 0 : index
    %0 = vector.load %arg2[%c0, %c0_0] : memref<8x128xbf16, #tpu.memory_space<vmem>>, vector<8x128xbf16>
    %1 = tpu.iota {dimensions = array<i32: 0>} : vector<128x128xi32>
    %c0_1 = arith.constant 0 : index
    %c0_2 = arith.constant 0 : index
    %2 = vector.load %arg3[%c0_1, %c0_2] : memref<1x128xi32, #tpu.memory_space<vmem>>, vector<1x128xi32>
    %3 = vector.broadcast %2 : vector<1x128xi32> to vector<128x128xi32>
    %4 = arith.cmpi eq, %1, %3 : vector<128x128xi32>
    %5 = arith.extui %4 : vector<128x128xi1> to vector<128x128xi32>
    %6 = arith.sitofp %5 : vector<128x128xi32> to vector<128x128xf32>
    %7 = arith.truncf %6 : vector<128x128xf32> to vector<128x128xbf16>
    %c0_3 = arith.constant 0 : index
    %c0_4 = arith.constant 0 : index
    %8 = vector.load %arg4[%c0_3, %c0_4] : memref<1x128xi32, #tpu.memory_space<vmem>>, vector<1x128xi32>
    %9 = vector.broadcast %8 : vector<1x128xi32> to vector<128x128xi32>
    %10 = arith.cmpi eq, %1, %9 : vector<128x128xi32>
    %11 = arith.extui %10 : vector<128x128xi1> to vector<128x128xi32>
    %12 = arith.sitofp %11 : vector<128x128xi32> to vector<128x128xf32>
    %13 = arith.truncf %12 : vector<128x128xf32> to vector<128x128xbf16>
    %cst = arith.constant dense<0.000000e+00> : vector<8x128xf32>
    %14 = tpu.matmul %0, %7, %cst {dimension_numbers = #tpu.dot_dimension_numbers<[1], [0], [0], [1], [0, 0, 1, 1], [], []>} : vector<8x128xbf16>, vector<128x128xbf16>, vector<8x128xf32> -> vector<8x128xf32>
    %cst_5 = arith.constant dense<0.000000e+00> : vector<8x128xf32>
    %15 = tpu.matmul %0, %13, %cst_5 {dimension_numbers = #tpu.dot_dimension_numbers<[1], [0], [0], [1], [0, 0, 1, 1], [], []>} : vector<8x128xbf16>, vector<128x128xbf16>, vector<8x128xf32> -> vector<8x128xf32>
    %16 = arith.mulf %14, %15 : vector<8x128xf32>
    %cst_6 = arith.constant 1.000000e+00 : f32
    %17 = vector.broadcast %cst_6 : f32 to vector<8x128xf32>
    %18 = arith.subf %17, %16 : vector<8x128xf32>
    %c0_7 = arith.constant 0 : index
    %c0_8 = arith.constant 0 : index
    %19 = vector.load %arg5[%c0_7, %c0_8] : memref<8x128xf32, #tpu.memory_space<vmem>>, vector<8x128xf32>
    tpu.vector_store %arg5[%c0_7, %c0_8], %18 {strides = array<i32>} : memref<8x128xf32, #tpu.memory_space<vmem>>, vector<8x128xf32>,
    return
  }
  func.func @transform_0(%arg0: i32, %arg1: i32) -> (i32, i32) {
    %c0_i32 = arith.constant 0 : i32
    %c0_i32_0 = arith.constant 0 : i32
    return %arg0, %c0_i32 : i32, i32
  }
  func.func @transform_1(%arg0: i32, %arg1: i32) -> (i32, i32) {
    %c0_i32 = arith.constant 0 : i32
    %c0_i32_0 = arith.constant 0 : i32
    return %c0_i32, %arg1 : i32, i32
  }
  func.func @transform_2(%arg0: i32, %arg1: i32) -> (i32, i32) {
    %c0_i32 = arith.constant 0 : i32
    %c0_i32_0 = arith.constant 0 : i32
    return %c0_i32, %arg1 : i32, i32
  }
  func.func @transform_3(%arg0: i32, %arg1: i32) -> (i32, i32) {
    %c0_i32 = arith.constant 0 : i32
    return %arg0, %arg1 : i32, i32
  }
}

</mosaic_0001>

<bundles_post_ra>
// kernel: tpu_custom_call.1
= control target key start
LH: loop header
LB: loop body
LE: loop exit
PB: predicated region body
PF: predicated region fallthrough
CT: control target
= control target key end

     0   :  { %8 = vsyncpa [#allocation3], 0  ;;  %s565_s0 = inlined_call_operand.hbm [shape: bf16[8,128], index: 0, kind: input, shape index: {}]   ;;  %s566_s1 = inlined_call_operand.vmem [shape: s32[1,128], index: 1, kind: input, shape index: {}]   ;;  %s567_s2 = inlined_call_operand.vmem [shape: s32[1,128], index: 2, kind: input, shape index: {}]   ;;  %s568_s3 = inlined_call_operand.hbm [shape: f32[8,128], index: 3, kind: output, shape index: {}]  }
   0x1   :  { %9 = vsyncpa [#allocation4], 0  ;;  %s439_s12 = smov [#allocation2]  }
   0x2   :  { %s16_s13 = sshll.u32 %s439_s12, 4  ;;  %s17_s13 = int_to_ptr.vmem [resolvable:$true] %s16_s13 }
   0x3   :  { %s403_s14 = scalar_lea.vmem %s17_s13, 64  ;;  %p408_p1 = scmp.lt.s32.totalorder %s17_s13, %s17_s13 }
   0x4   :  { %p404_p0 = scmp.ne.s32.totalorder %s17_s13, %s403_s14  ;;  %p409_p2 = scmp.lt.s32.totalorder %s403_s14, %s403_s14 }
   0x6   :  { %p410_p3 = por %p409_p2, %p408_p1 }
   0x8   :  { %p411_p4 = pnand %p410_p3, %p404_p0 }
   0xa   :  { %414 = shalt.err (!%p411_p4)
}
   0xb   :  { %19 = dma.hbm_to_vmem [thread:$0]  %s565_s0, 64, %s17_s13, [#allocation3]  }
   0xc   :  { %435 = dma.done.wait [#allocation3], 64  }
   0xd   :  { %436 = vsyncadd [#allocation3], 4294967232  ;;  %v29_v0 = vlaneseq  ;;  %v440_v1 = vmov 0.0   ;;  %vm441_vm0 = vmmov 0   ;;  %v480_v7 = vld [vmem:[%s566_s1] ss:$0 sm:$0xff] }
   0xe   :  { %350 = vmatprep.subr.bf16.mxu0 %v440_v1  ;;  %370 = vmatprep.subr.bf16.mxu1 %v440_v1  ;;  %v485_v8 = vld [vmem:[%s567_s2] ss:$0 sm:$0xff]  ;;  %v442_v11 = vmov 1.0|1.0   ;;  %s443_s1 = smov [#allocation5]  }
   0xf   :  { %v469_v2 = vshrl.u32 %v29_v0, 7  ;;  %366 = vmatprep.mubr.msk.bf16.mxu0 %vm441_vm0, %v440_v1  ;;  %386 = vmatprep.mubr.msk.bf16.mxu1 %vm441_vm0, %v440_v1  ;;  %v28_v21 = vld [vmem:[#allocation2] sm:$0xf]  ;;  %s257_s2 = sshll.u32 %s443_s1, 4  ;;  %s258_s2 = int_to_ptr.vmem [resolvable:$true] %s257_s2 }
  0x10   :  { %s415_s20 = scalar_lea.vmem %s258_s2, 128  ;;  %p420_p6 = scmp.lt.s32.totalorder %s258_s2, %s258_s2 }
  0x11   :  { %v44_v3 = vadd.s32 112, %v469_v2  ;;  %v45_v4 = vadd.s32 120, %v469_v2  ;;  %v42_v5 = vadd.s32 96, %v469_v2  ;;  %v43_v6 = vadd.s32 104, %v469_v2  ;;  %p416_p5 = scmp.ne.s32.totalorder %s258_s2, %s415_s20  ;;  %p421_p7 = scmp.lt.s32.totalorder %s415_s20, %s415_s20 }
  0x12   :  { %v40_v9 = vadd.s32 80, %v469_v2  ;;  %v41_v10 = vadd.s32 88, %v469_v2  ;;  %v38_v12 = vadd.s32 64, %v469_v2  ;;  %v39_v13 = vadd.s32 72, %v469_v2 }
  0x13   :  { %vm65_vm1 = vcmp.eq.s32.totalorder %v44_v3, %v480_v7  ;;  %vm66_vm2 = vcmp.eq.s32.totalorder %v45_v4, %v480_v7  ;;  %vm126_vm3 = vcmp.eq.s32.totalorder %v44_v3, %v485_v8  ;;  %vm127_vm4 = vcmp.eq.s32.totalorder %v45_v4, %v485_v8  ;;  %p422_p8 = por %p421_p7, %p420_p6 }
  0x14   :  { %vm300_vm5 = vmpackc.low %vm66_vm2, %vm65_vm1  ;;  %vm63_vm6 = vcmp.eq.s32.totalorder %v42_v5, %v480_v7  ;;  %vm64_vm7 = vcmp.eq.s32.totalorder %v43_v6, %v480_v7  ;;  %vm124_vm8 = vcmp.eq.s32.totalorder %v42_v5, %v485_v8  ;;  %vm125_vm9 = vcmp.eq.s32.totalorder %v43_v6, %v485_v8 }
  0x15   :  { %351 = vmatpush3.bf16.msk.msra.mxu0 %vm300_vm5, %v442_v11  ;;  %vm316_vm10 = vmpackc.low %vm127_vm4, %vm126_vm3  ;;  %vm61_vm13 = vcmp.eq.s32.totalorder %v40_v9, %v480_v7  ;;  %vm62_vm14 = vcmp.eq.s32.totalorder %v41_v10, %v480_v7  ;;  %vm122_vm15 = vcmp.eq.s32.totalorder %v40_v9, %v485_v8  ;;  %vm123_vm0 = vcmp.eq.s32.totalorder %v41_v10, %v485_v8  ;;  %p423_p9 = pnand %p422_p8, %p416_p5 }
  0x16   :  { %371 = vmatpush3.bf16.msk.msra.mxu1 %vm316_vm10, %v442_v11  ;;  %352 = vmatprep.subr.bf16.mxu0 %v440_v1  ;;  %vm302_vm11 = vmpackc.low %vm64_vm7, %vm63_vm6  ;;  %vm59_vm3 = vcmp.eq.s32.totalorder %v38_v12, %v480_v7  ;;  %vm60_vm4 = vcmp.eq.s32.totalorder %v39_v13, %v480_v7  ;;  %v36_v14 = vadd.s32 48, %v469_v2  ;;  %v37_v15 = vadd.s32 56, %v469_v2 }
  0x17   :  { %372 = vmatprep.subr.bf16.mxu1 %v440_v1  ;;  %vm318_vm12 = vmpackc.low %vm125_vm9, %vm124_vm8  ;;  %vm120_vm5 = vcmp.eq.s32.totalorder %v38_v12, %v485_v8  ;;  %vm121_vm6 = vcmp.eq.s32.totalorder %v39_v13, %v485_v8  ;;  %v34_v16 = vadd.s32 32, %v469_v2  ;;  %v35_v17 = vadd.s32 40, %v469_v2 }
  0x18   :  { %vm304_vm1 = vmpackc.low %vm62_vm14, %vm61_vm13  ;;  %vm57_vm9 = vcmp.eq.s32.totalorder %v36_v14, %v480_v7  ;;  %vm58_vm10 = vcmp.eq.s32.totalorder %v37_v15, %v480_v7  ;;  %v32_v18 = vadd.s32 16, %v469_v2  ;;  %v33_v19 = vadd.s32 24, %v469_v2 }
  0x19   :  { %353 = vmatpush3.bf16.msk.msra.mxu0 %vm302_vm11, %v442_v11  ;;  %vm320_vm2 = vmpackc.low %vm123_vm0, %vm122_vm15  ;;  %vm118_vm11 = vcmp.eq.s32.totalorder %v36_v14, %v485_v8  ;;  %vm55_vm15 = vcmp.eq.s32.totalorder %v34_v16, %v480_v7  ;;  %vm56_vm0 = vcmp.eq.s32.totalorder %v35_v17, %v480_v7  ;;  %v31_v20 = vadd.s32 8, %v469_v2 }
  0x1a   :  { %373 = vmatpush3.bf16.msk.msra.mxu1 %vm318_vm12, %v442_v11  ;;  %354 = vmatprep.subr.bf16.mxu0 %v440_v1  ;;  %vm306_vm7 = vmpackc.low %vm60_vm4, %vm59_vm3  ;;  %vm119_vm12 = vcmp.eq.s32.totalorder %v37_v15, %v485_v8 }
  0x1b   :  { %374 = vmatprep.subr.bf16.mxu1 %v440_v1  ;;  %vm322_vm8 = vmpackc.low %vm121_vm6, %vm120_vm5  ;;  %vm53_vm5 = vcmp.eq.s32.totalorder %v32_v18, %v480_v7  ;;  %vm54_vm6 = vcmp.eq.s32.totalorder %v33_v19, %v480_v7 }
  0x1c   :  { %vm308_vm13 = vmpackc.low %vm58_vm10, %vm57_vm9 }
  0x1d   :  { %355 = vmatpush3.bf16.msk.msra.mxu0 %vm304_vm1, %v442_v11  ;;  %vm324_vm14 = vmpackc.low %vm119_vm12, %vm118_vm11  ;;  %vm116_vm1 = vcmp.eq.s32.totalorder %v34_v16, %v485_v8  ;;  %vm51_vm11 = vcmp.eq.s32.totalorder %v469_v2, %v480_v7  ;;  %vm52_vm12 = vcmp.eq.s32.totalorder %v31_v20, %v480_v7 }
  0x1e   :  { %375 = vmatpush3.bf16.msk.msra.mxu1 %vm320_vm2, %v442_v11  ;;  %356 = vmatprep.subr.bf16.mxu0 %v440_v1  ;;  %vm117_vm2 = vcmp.eq.s32.totalorder %v35_v17, %v485_v8  ;;  %vm310_vm3 = vmpackc.low %vm56_vm0, %vm55_vm15 }
  0x1f   :  { %376 = vmatprep.subr.bf16.mxu1 %v440_v1  ;;  %vm326_vm4 = vmpackc.low %vm117_vm2, %vm116_vm1 }
  0x20   :  { %vm312_vm9 = vmpackc.low %vm54_vm6, %vm53_vm5 }
  0x21   :  { %357 = vmatpush3.bf16.msk.msra.mxu0 %vm306_vm7, %v442_v11  ;;  %vm114_vm7 = vcmp.eq.s32.totalorder %v32_v18, %v485_v8  ;;  %vm314_vm15 = vmpackc.low %vm52_vm12, %vm51_vm11 }
  0x22   :  { %377 = vmatpush3.bf16.msk.msra.mxu1 %vm322_vm8, %v442_v11  ;;  %358 = vmatprep.subr.bf16.mxu0 %v440_v1  ;;  %vm115_vm8 = vcmp.eq.s32.totalorder %v33_v19, %v485_v8 }
  0x23   :  { %378 = vmatprep.subr.bf16.mxu1 %v440_v1  ;;  %vm328_vm10 = vmpackc.low %vm115_vm8, %vm114_vm7 }
  0x25   :  { %359 = vmatpush3.bf16.msk.msra.mxu0 %vm308_vm13, %v442_v11  ;;  %vm112_vm13 = vcmp.eq.s32.totalorder %v469_v2, %v485_v8 }
  0x26   :  { %379 = vmatpush3.bf16.msk.msra.mxu1 %vm324_vm14, %v442_v11  ;;  %360 = vmatprep.subr.bf16.mxu0 %v440_v1  ;;  %vm113_vm14 = vcmp.eq.s32.totalorder %v31_v20, %v485_v8 }
  0x27   :  { %380 = vmatprep.subr.bf16.mxu1 %v440_v1  ;;  %vm330_vm0 = vmpackc.low %vm113_vm14, %vm112_vm13 }
  0x29   :  { %361 = vmatpush3.bf16.msk.msra.mxu0 %vm310_vm3, %v442_v11 }
  0x2a   :  { %381 = vmatpush3.bf16.msk.msra.mxu1 %vm326_vm4, %v442_v11  ;;  %362 = vmatprep.subr.bf16.mxu0 %v440_v1 }
  0x2b   :  { %382 = vmatprep.subr.bf16.mxu1 %v440_v1 }
  0x2d   :  { %363 = vmatpush3.bf16.msk.msra.mxu0 %vm312_vm9, %v442_v11 }
  0x2e   :  { %383 = vmatpush3.bf16.msk.msra.mxu1 %vm328_vm10, %v442_v11  ;;  %364 = vmatprep.subr.bf16.mxu0 %v440_v1 }
  0x2f   :  { %384 = vmatprep.subr.bf16.mxu1 %v440_v1 }
  0x31   :  { %365 = vmatpush3.bf16.msk.msra.mxu0 %vm314_vm15, %v442_v11 }
  0x32   :  { %385 = vmatpush3.bf16.msk.msra.mxu1 %vm330_vm0, %v442_v11 }
  0x34   :  { %367 = vmatmul.mubr.bf16.vlgmr.msra.gmra.mxu0 %v28_v21 }
  0x35   :  { %387 = vmatmul.mubr.bf16.vlgmr.msra.gmra.mxu1 %v28_v21 }
  0xf4   :  { %v202_v22 = vpop.f32.mrf.mxu0 }
  0xf5   :  { %v242_v23 = vpop.f32.mrf.mxu1 }
  0xf6   :  { %v248_v24 = vmul.f32 %v242_v23, %v202_v22  ;;  %v368_v25 = vpop.f32.mrf.mxu0 }
  0xf7   :  { %v388_v26 = vpop.f32.mrf.mxu1 }
  0xf8   :  { %v249_v27 = vsub.f32 1.0, %v248_v24  ;;  %v205_v28 = vpop.f32.mrf.mxu0 }
  0xf9   :  { %v245_v29 = vpop.f32.mrf.mxu1 }
  0xfa   :  { %250 = vst [vmem:[#allocation5] sm:$0xff] %v249_v27  ;;  %v369_v30 = vpop.f32.mrf.mxu0 }
  0xfb   :  { %v389_v31 = vpop.f32.mrf.mxu1 }
  0xfc   :  { %426 = shalt.err (!%p423_p9)
}
  0xfd   :  { %260 = dma.vmem_to_hbm [thread:$0]  %s258_s2, 128, %s568_s3, [#allocation4]  }
  0xfe   :  { %437 = dma.done.wait [#allocation4], 128  }
  0xff   :  { %438 = vsyncadd [#allocation4], 4294967168 }
 0x100   :  { %264 = vsyncpa [#allocation3], 1 }
 0x101   :  { %265 = vsyncpa [#allocation4], 1 }

</bundles_post_ra>
